<compile_context>
chip_gen: v7x
topology: tpu7x:2x2x1
jax: 0.10.0
libtpu: 0.0.40
codegen_flags: <defaults>
</compile_context>

<pallas_src>
import functools

import jax
import jax.numpy as jnp
from jax.experimental import pallas as pl
from jax.experimental.pallas import tpu as pltpu

# Logical layer sizes (from the nn.Module __init__)
D_IN = 20 * 20   # 400
D_H1 = 15 * 15   # 225
D_H2 = 10 * 10   # 100
D_Z  = 5 * 5     # 25

# Lane-padded sizes (multiples of 128)
P_IN = 512
P_H1 = 256
P_H2 = 128
P_Z  = 128

_DIMS   = [(D_IN, D_H1), (D_H1, D_H2), (D_H2, D_Z),
           (D_Z, D_H2), (D_H2, D_H1), (D_H1, D_IN)]
_P_DIMS = [(P_IN, P_H1), (P_H1, P_H2), (P_H2, P_Z),
           (P_Z, P_H2), (P_H2, P_H1), (P_H1, P_IN)]


def _round_up(n, m):
    return (n + m - 1) // m * m


def _autoencoder_kernel(
    x_ref,
    w1_ref, b1_ref,
    w2_ref, b2_ref,
    w3_ref, b3_ref,
    w4_ref, b4_ref,
    w5_ref, b5_ref,
    w6_ref, b6_ref,
    enc_ref, dec_ref,
):
    """One batch tile: 6 matmuls (bf16 inputs, f32 accumulate) + activations."""
    x = x_ref[...]  # bf16 [TM, P_IN]

    def linear(h_bf16, w_ref, b_ref):
        # MXU matmul with f32 accumulation, f32 bias broadcast-add.
        return (
            jnp.dot(h_bf16, w_ref[...], preferred_element_type=jnp.float32)
            + b_ref[...]
        )

    # ---- encoder ----
    h = jnp.tanh(linear(x, w1_ref, b1_ref)).astype(jnp.bfloat16)
    h = jnp.tanh(linear(h, w2_ref, b2_ref)).astype(jnp.bfloat16)
    encoded = linear(h, w3_ref, b3_ref)                      # f32, no activation

    # ---- decoder ----
    h = jnp.tanh(linear(encoded.astype(jnp.bfloat16), w4_ref, b4_ref))
    h = h.astype(jnp.bfloat16)
    h = jnp.tanh(linear(h, w5_ref, b5_ref)).astype(jnp.bfloat16)
    decoded = jax.nn.sigmoid(linear(h, w6_ref, b6_ref))      # f32

    enc_ref[...] = encoded
    dec_ref[...] = decoded


@functools.partial(jax.jit, static_argnames=("tm",))
def autoencoder_forward(x, params, *, tm=512):
    """x: [B, 400] float32; params: flat tuple (w1,b1,...,w6,b6) with W[in,out].

    Returns (encoded [B, 25] f32, decoded [B, 400] f32).
    """
    B = x.shape[0]
    TM = min(tm, _round_up(B, 8))        # batch tile (multiple of 8 sublanes)
    Bp = _round_up(B, TM)
    grid = (Bp // TM,)

    # --- pad + cast inputs (zero padding keeps the math identical) ---
    x_p = jnp.pad(x, ((0, Bp - B), (0, P_IN - D_IN))).astype(jnp.bfloat16)

    padded_params = []
    for li, (pin, pout) in enumerate(_P_DIMS):
        w = params[2 * li]
        b = params[2 * li + 1]
        w_p = jnp.pad(w, ((0, pin - w.shape[0]), (0, pout - w.shape[1])))
        b_p = jnp.pad(b, (0, pout - b.shape[0])).reshape(1, pout)
        padded_params += [w_p.astype(jnp.bfloat16), b_p.astype(jnp.float32)]

    # --- block specs ---
    x_spec = pl.BlockSpec((TM, P_IN), lambda i: (i, 0))
    param_specs = []
    for li, (pin, pout) in enumerate(_P_DIMS):
        param_specs.append(pl.BlockSpec((pin, pout), lambda i: (0, 0)))  # weight
        param_specs.append(pl.BlockSpec((1, pout), lambda i: (0, 0)))    # bias
    enc_spec = pl.BlockSpec((TM, P_Z), lambda i: (i, 0))
    dec_spec = pl.BlockSpec((TM, P_IN), lambda i: (i, 0))

    enc_shape = jax.ShapeDtypeStruct((Bp, P_Z), jnp.float32)
    dec_shape = jax.ShapeDtypeStruct((Bp, P_IN), jnp.float32)

    # Advisory cost for the XLA scheduler (unpadded math).
    flops = 2 * B * 2 * (D_IN * D_H1 + D_H1 * D_H2 + D_H2 * D_Z)
    transc = B * (D_H1 + D_H2 + D_H2 + D_H1 + D_IN)
    weight_bytes = sum(pin * pout * 2 + pout * 4 for pin, pout in _P_DIMS)
    bytes_accessed = Bp * (P_IN * 2 + P_Z * 4 + P_IN * 4) + weight_bytes

    enc_p, dec_p = pl.pallas_call(
        _autoencoder_kernel,
        out_shape=(enc_shape, dec_shape),
        grid=grid,
        in_specs=[x_spec] + param_specs,
        out_specs=(enc_spec, dec_spec),
        compiler_params=pltpu.CompilerParams(
            dimension_semantics=("parallel",),
            vmem_limit_bytes=24 << 20,
        ),
        cost_estimate=pl.CostEstimate(
            flops=flops, transcendentals=transc, bytes_accessed=bytes_accessed
        ),
    )(x_p, *padded_params)

    # Slice away batch and lane padding.
    return enc_p[:B, :D_Z], dec_p[:B, :D_IN]


def init_params(key):
    """Deterministic PyTorch-style init: U(-1/sqrt(fan_in), 1/sqrt(fan_in)).

    Weights are returned as [in, out] (transposed relative to nn.Linear.weight).
    """
    params = []
    for (fan_in, fan_out) in _DIMS:
        key, kw, kb = jax.random.split(key, 3)
        bound = 1.0 / jnp.sqrt(fan_in)
        w = jax.random.uniform(kw, (fan_in, fan_out), jnp.float32, -bound, bound)
        b = jax.random.uniform(kb, (fan_out,), jnp.float32, -bound, bound)
        params += [w, b]
    return tuple(params)


def reference_forward(x, params):
    """Plain JAX reference using the same bf16-input / f32-accumulate recipe."""
    w1, b1, w2, b2, w3, b3, w4, b4, w5, b5, w6, b6 = params
    bf = lambda a: a.astype(jnp.bfloat16)

    def lin(h, w, b):
        return jnp.dot(bf(h), bf(w), preferred_element_type=jnp.float32) + b

    h = jnp.tanh(lin(x, w1, b1))
    h = jnp.tanh(lin(h, w2, b2))
    enc = lin(h, w3, b3)
    h = jnp.tanh(lin(enc, w4, b4))
    h = jnp.tanh(lin(h, w5, b5))
    dec = jax.nn.sigmoid(lin(h, w6, b6))
    return enc, dec


if __name__ == "__main__":
    key = jax.random.PRNGKey(0)
    key, kx = jax.random.split(key)

    batch = 8
    x = jax.random.uniform(kx, (batch, D_IN), jnp.float32)  # [B, 400]
    params = init_params(key)

    enc, dec = autoencoder_forward(x, params)
    jax.block_until_ready((enc, dec))

    enc_ref, dec_ref = reference_forward(x, params)
    assert enc.shape == (batch, D_Z) and dec.shape == (batch, D_IN)
    assert jnp.allclose(enc, enc_ref, atol=2e-3, rtol=2e-3), "encoded mismatch"
    assert jnp.allclose(dec, dec_ref, atol=2e-3, rtol=2e-3), "decoded mismatch"

    print("KERNEL_OK")
</pallas_src>

<mosaic_0001>
module attributes {stable_mosaic.version = 11 : i64} {
  func.func @_autoencoder_kernel(%arg0: i32, %arg1: memref<8x512xbf16, #tpu.memory_space<vmem>>, %arg2: memref<512x256xbf16, #tpu.memory_space<vmem>>, %arg3: memref<1x256xf32, #tpu.memory_space<vmem>>, %arg4: memref<256x128xbf16, #tpu.memory_space<vmem>>, %arg5: memref<1x128xf32, #tpu.memory_space<vmem>>, %arg6: memref<128x128xbf16, #tpu.memory_space<vmem>>, %arg7: memref<1x128xf32, #tpu.memory_space<vmem>>, %arg8: memref<128x128xbf16, #tpu.memory_space<vmem>>, %arg9: memref<1x128xf32, #tpu.memory_space<vmem>>, %arg10: memref<128x256xbf16, #tpu.memory_space<vmem>>, %arg11: memref<1x256xf32, #tpu.memory_space<vmem>>, %arg12: memref<256x512xbf16, #tpu.memory_space<vmem>>, %arg13: memref<1x512xf32, #tpu.memory_space<vmem>>, %arg14: memref<8x128xf32, #tpu.memory_space<vmem>>, %arg15: memref<8x512xf32, #tpu.memory_space<vmem>>) attributes {dimension_semantics = [#tpu.dimension_semantics<parallel>], iteration_bounds = array<i64: 1>, scalar_prefetch = 0 : i64, scratch_operands = 0 : i64, tpu.core_type = #tpu.core_type<tc>, window_params = [{transform_indices = @transform_0, window_bounds = array<i64: 8, 512>}, {pipeline_mode = #tpu.pipeline_mode<synchronous>, transform_indices = @transform_1, window_bounds = array<i64: 512, 256>}, {pipeline_mode = #tpu.pipeline_mode<synchronous>, transform_indices = @transform_2, window_bounds = array<i64: 1, 256>}, {pipeline_mode = #tpu.pipeline_mode<synchronous>, transform_indices = @transform_3, window_bounds = array<i64: 256, 128>}, {pipeline_mode = #tpu.pipeline_mode<synchronous>, transform_indices = @transform_4, window_bounds = array<i64: 1, 128>}, {pipeline_mode = #tpu.pipeline_mode<synchronous>, transform_indices = @transform_5, window_bounds = array<i64: 128, 128>}, {pipeline_mode = #tpu.pipeline_mode<synchronous>, transform_indices = @transform_6, window_bounds = array<i64: 1, 128>}, {pipeline_mode = #tpu.pipeline_mode<synchronous>, transform_indices = @transform_7, window_bounds = array<i64: 128, 128>}, {pipeline_mode = #tpu.pipeline_mode<synchronous>, transform_indices = @transform_8, window_bounds = array<i64: 1, 128>}, {pipeline_mode = #tpu.pipeline_mode<synchronous>, transform_indices = @transform_9, window_bounds = array<i64: 128, 256>}, {pipeline_mode = #tpu.pipeline_mode<synchronous>, transform_indices = @transform_10, window_bounds = array<i64: 1, 256>}, {pipeline_mode = #tpu.pipeline_mode<synchronous>, transform_indices = @transform_11, window_bounds = array<i64: 256, 512>}, {pipeline_mode = #tpu.pipeline_mode<synchronous>, transform_indices = @transform_12, window_bounds = array<i64: 1, 512>}, {transform_indices = @transform_13, window_bounds = array<i64: 8, 128>}, {transform_indices = @transform_14, window_bounds = array<i64: 8, 512>}]} {
    %c0 = arith.constant 0 : index
    %c0_0 = arith.constant 0 : index
    %0 = vector.load %arg1[%c0, %c0_0] : memref<8x512xbf16, #tpu.memory_space<vmem>>, vector<8x512xbf16>
    %c0_1 = arith.constant 0 : index
    %c0_2 = arith.constant 0 : index
    %1 = vector.load %arg2[%c0_1, %c0_2] : memref<512x256xbf16, #tpu.memory_space<vmem>>, vector<512x256xbf16>
    %cst = arith.constant dense<0.000000e+00> : vector<8x256xf32>
    %2 = tpu.matmul %0, %1, %cst {dimension_numbers = #tpu.dot_dimension_numbers<[1], [0], [0], [1], [0, 0, 1, 1], [], []>} : vector<8x512xbf16>, vector<512x256xbf16>, vector<8x256xf32> -> vector<8x256xf32>
    %c0_3 = arith.constant 0 : index
    %c0_4 = arith.constant 0 : index
    %3 = vector.load %arg3[%c0_3, %c0_4] : memref<1x256xf32, #tpu.memory_space<vmem>>, vector<1x256xf32>
    %4 = vector.broadcast %3 : vector<1x256xf32> to vector<8x256xf32>
    %5 = arith.addf %2, %4 : vector<8x256xf32>
    %6 = math.tanh %5 : vector<8x256xf32>
    %7 = arith.truncf %6 : vector<8x256xf32> to vector<8x256xbf16>
    %c0_5 = arith.constant 0 : index
    %c0_6 = arith.constant 0 : index
    %8 = vector.load %arg4[%c0_5, %c0_6] : memref<256x128xbf16, #tpu.memory_space<vmem>>, vector<256x128xbf16>
    %cst_7 = arith.constant dense<0.000000e+00> : vector<8x128xf32>
    %9 = tpu.matmul %7, %8, %cst_7 {dimension_numbers = #tpu.dot_dimension_numbers<[1], [0], [0], [1], [0, 0, 1, 1], [], []>} : vector<8x256xbf16>, vector<256x128xbf16>, vector<8x128xf32> -> vector<8x128xf32>
    %c0_8 = arith.constant 0 : index
    %c0_9 = arith.constant 0 : index
    %10 = vector.load %arg5[%c0_8, %c0_9] : memref<1x128xf32, #tpu.memory_space<vmem>>, vector<1x128xf32>
    %11 = vector.broadcast %10 : vector<1x128xf32> to vector<8x128xf32>
    %12 = arith.addf %9, %11 : vector<8x128xf32>
    %13 = math.tanh %12 : vector<8x128xf32>
    %14 = arith.truncf %13 : vector<8x128xf32> to vector<8x128xbf16>
    %c0_10 = arith.constant 0 : index
    %c0_11 = arith.constant 0 : index
    %15 = vector.load %arg6[%c0_10, %c0_11] : memref<128x128xbf16, #tpu.memory_space<vmem>>, vector<128x128xbf16>
    %cst_12 = arith.constant dense<0.000000e+00> : vector<8x128xf32>
    %16 = tpu.matmul %14, %15, %cst_12 {dimension_numbers = #tpu.dot_dimension_numbers<[1], [0], [0], [1], [0, 0, 1, 1], [], []>} : vector<8x128xbf16>, vector<128x128xbf16>, vector<8x128xf32> -> vector<8x128xf32>
    %c0_13 = arith.constant 0 : index
    %c0_14 = arith.constant 0 : index
    %17 = vector.load %arg7[%c0_13, %c0_14] : memref<1x128xf32, #tpu.memory_space<vmem>>, vector<1x128xf32>
    %18 = vector.broadcast %17 : vector<1x128xf32> to vector<8x128xf32>
    %19 = arith.addf %16, %18 : vector<8x128xf32>
    %20 = arith.truncf %19 : vector<8x128xf32> to vector<8x128xbf16>
    %c0_15 = arith.constant 0 : index
    %c0_16 = arith.constant 0 : index
    %21 = vector.load %arg8[%c0_15, %c0_16] : memref<128x128xbf16, #tpu.memory_space<vmem>>, vector<128x128xbf16>
    %cst_17 = arith.constant dense<0.000000e+00> : vector<8x128xf32>
    %22 = tpu.matmul %20, %21, %cst_17 {dimension_numbers = #tpu.dot_dimension_numbers<[1], [0], [0], [1], [0, 0, 1, 1], [], []>} : vector<8x128xbf16>, vector<128x128xbf16>, vector<8x128xf32> -> vector<8x128xf32>
    %c0_18 = arith.constant 0 : index
    %c0_19 = arith.constant 0 : index
    %23 = vector.load %arg9[%c0_18, %c0_19] : memref<1x128xf32, #tpu.memory_space<vmem>>, vector<1x128xf32>
    %24 = vector.broadcast %23 : vector<1x128xf32> to vector<8x128xf32>
    %25 = arith.addf %22, %24 : vector<8x128xf32>
    %26 = math.tanh %25 : vector<8x128xf32>
    %27 = arith.truncf %26 : vector<8x128xf32> to vector<8x128xbf16>
    %c0_20 = arith.constant 0 : index
    %c0_21 = arith.constant 0 : index
    %28 = vector.load %arg10[%c0_20, %c0_21] : memref<128x256xbf16, #tpu.memory_space<vmem>>, vector<128x256xbf16>
    %cst_22 = arith.constant dense<0.000000e+00> : vector<8x256xf32>
    %29 = tpu.matmul %27, %28, %cst_22 {dimension_numbers = #tpu.dot_dimension_numbers<[1], [0], [0], [1], [0, 0, 1, 1], [], []>} : vector<8x128xbf16>, vector<128x256xbf16>, vector<8x256xf32> -> vector<8x256xf32>
    %c0_23 = arith.constant 0 : index
    %c0_24 = arith.constant 0 : index
    %30 = vector.load %arg11[%c0_23, %c0_24] : memref<1x256xf32, #tpu.memory_space<vmem>>, vector<1x256xf32>
    %31 = vector.broadcast %30 : vector<1x256xf32> to vector<8x256xf32>
    %32 = arith.addf %29, %31 : vector<8x256xf32>
    %33 = math.tanh %32 : vector<8x256xf32>
    %34 = arith.truncf %33 : vector<8x256xf32> to vector<8x256xbf16>
    %c0_25 = arith.constant 0 : index
    %c0_26 = arith.constant 0 : index
    %35 = vector.load %arg12[%c0_25, %c0_26] : memref<256x512xbf16, #tpu.memory_space<vmem>>, vector<256x512xbf16>
    %cst_27 = arith.constant dense<0.000000e+00> : vector<8x512xf32>
    %36 = tpu.matmul %34, %35, %cst_27 {dimension_numbers = #tpu.dot_dimension_numbers<[1], [0], [0], [1], [0, 0, 1, 1], [], []>} : vector<8x256xbf16>, vector<256x512xbf16>, vector<8x512xf32> -> vector<8x512xf32>
    %c0_28 = arith.constant 0 : index
    %c0_29 = arith.constant 0 : index
    %37 = vector.load %arg13[%c0_28, %c0_29] : memref<1x512xf32, #tpu.memory_space<vmem>>, vector<1x512xf32>
    %38 = vector.broadcast %37 : vector<1x512xf32> to vector<8x512xf32>
    %39 = arith.addf %36, %38 : vector<8x512xf32>
    %40 = arith.negf %39 : vector<8x512xf32>
    %41 = math.exp %40 : vector<8x512xf32>
    %cst_30 = arith.constant 1.000000e+00 : f32
    %42 = vector.broadcast %cst_30 : f32 to vector<8x512xf32>
    %43 = arith.addf %42, %41 : vector<8x512xf32>
    %44 = arith.divf %42, %43 : vector<8x512xf32>
    %c0_31 = arith.constant 0 : index
    %c0_32 = arith.constant 0 : index
    %45 = vector.load %arg14[%c0_31, %c0_32] : memref<8x128xf32, #tpu.memory_space<vmem>>, vector<8x128xf32>
    tpu.vector_store %arg14[%c0_31, %c0_32], %19 {strides = array<i32>} : memref<8x128xf32, #tpu.memory_space<vmem>>, vector<8x128xf32>,
    %c0_33 = arith.constant 0 : index
    %c0_34 = arith.constant 0 : index
    %46 = vector.load %arg15[%c0_33, %c0_34] : memref<8x512xf32, #tpu.memory_space<vmem>>, vector<8x512xf32>
    tpu.vector_store %arg15[%c0_33, %c0_34], %44 {strides = array<i32>} : memref<8x512xf32, #tpu.memory_space<vmem>>, vector<8x512xf32>,
    return
  }
  func.func @transform_0(%arg0: i32) -> (i32, i32) {
    %c0_i32 = arith.constant 0 : i32
    %c0_i32_0 = arith.constant 0 : i32
    return %arg0, %c0_i32 : i32, i32
  }
  func.func @transform_1(%arg0: i32) -> (i32, i32) {
    %c0_i32 = arith.constant 0 : i32
    %c0_i32_0 = arith.constant 0 : i32
    %c0_i32_1 = arith.constant 0 : i32
    return %c0_i32, %c0_i32_0 : i32, i32
  }
  func.func @transform_2(%arg0: i32) -> (i32, i32) {
    %c0_i32 = arith.constant 0 : i32
    %c0_i32_0 = arith.constant 0 : i32
    %c0_i32_1 = arith.constant 0 : i32
    return %c0_i32, %c0_i32_0 : i32, i32
  }
  func.func @transform_3(%arg0: i32) -> (i32, i32) {
    %c0_i32 = arith.constant 0 : i32
    %c0_i32_0 = arith.constant 0 : i32
    %c0_i32_1 = arith.constant 0 : i32
    return %c0_i32, %c0_i32_0 : i32, i32
  }
  func.func @transform_4(%arg0: i32) -> (i32, i32) {
    %c0_i32 = arith.constant 0 : i32
    %c0_i32_0 = arith.constant 0 : i32
    %c0_i32_1 = arith.constant 0 : i32
    return %c0_i32, %c0_i32_0 : i32, i32
  }
  func.func @transform_5(%arg0: i32) -> (i32, i32) {
    %c0_i32 = arith.constant 0 : i32
    %c0_i32_0 = arith.constant 0 : i32
    %c0_i32_1 = arith.constant 0 : i32
    return %c0_i32, %c0_i32_0 : i32, i32
  }
  func.func @transform_6(%arg0: i32) -> (i32, i32) {
    %c0_i32 = arith.constant 0 : i32
    %c0_i32_0 = arith.constant 0 : i32
    %c0_i32_1 = arith.constant 0 : i32
    return %c0_i32, %c0_i32_0 : i32, i32
  }
  func.func @transform_7(%arg0: i32) -> (i32, i32) {
    %c0_i32 = arith.constant 0 : i32
    %c0_i32_0 = arith.constant 0 : i32
    %c0_i32_1 = arith.constant 0 : i32
    return %c0_i32, %c0_i32_0 : i32, i32
  }
  func.func @transform_8(%arg0: i32) -> (i32, i32) {
    %c0_i32 = arith.constant 0 : i32
    %c0_i32_0 = arith.constant 0 : i32
    %c0_i32_1 = arith.constant 0 : i32
    return %c0_i32, %c0_i32_0 : i32, i32
  }
  func.func @transform_9(%arg0: i32) -> (i32, i32) {
    %c0_i32 = arith.constant 0 : i32
    %c0_i32_0 = arith.constant 0 : i32
    %c0_i32_1 = arith.constant 0 : i32
    return %c0_i32, %c0_i32_0 : i32, i32
  }
  func.func @transform_10(%arg0: i32) -> (i32, i32) {
    %c0_i32 = arith.constant 0 : i32
    %c0_i32_0 = arith.constant 0 : i32
    %c0_i32_1 = arith.constant 0 : i32
    return %c0_i32, %c0_i32_0 : i32, i32
  }
  func.func @transform_11(%arg0: i32) -> (i32, i32) {
    %c0_i32 = arith.constant 0 : i32
    %c0_i32_0 = arith.constant 0 : i32
    %c0_i32_1 = arith.constant 0 : i32
    return %c0_i32, %c0_i32_0 : i32, i32
  }
  func.func @transform_12(%arg0: i32) -> (i32, i32) {
    %c0_i32 = arith.constant 0 : i32
    %c0_i32_0 = arith.constant 0 : i32
    %c0_i32_1 = arith.constant 0 : i32
    return %c0_i32, %c0_i32_0 : i32, i32
  }
  func.func @transform_13(%arg0: i32) -> (i32, i32) {
    %c0_i32 = arith.constant 0 : i32
    %c0_i32_0 = arith.constant 0 : i32
    return %arg0, %c0_i32 : i32, i32
  }
  func.func @transform_14(%arg0: i32) -> (i32, i32) {
    %c0_i32 = arith.constant 0 : i32
    %c0_i32_0 = arith.constant 0 : i32
    return %arg0, %c0_i32 : i32, i32
  }
}

</mosaic_0001>

<bundles_post_ra>
// kernel: autoencoder_forward.1
= control target key start
LH: loop header
LB: loop body
LE: loop exit
PB: predicated region body
PF: predicated region fallthrough
CT: control target
= control target key end

     0   :  { %20 = vsyncpa [#allocation3], 0  ;;  %s2957_s0 = inlined_call_operand.vmem [shape: bf16[8,512], index: 0, kind: input, shape index: {}]   ;;  %s2958_s1 = inlined_call_operand.vmem [shape: bf16[512,256], index: 1, kind: input, shape index: {}]   ;;  %s2959_s2 = inlined_call_operand.vmem [shape: f32[1,256], index: 2, kind: input, shape index: {}]   ;;  %s2960_s3 = inlined_call_operand.vmem [shape: bf16[256,128], index: 3, kind: input, shape index: {}]   ;;  %s2961_s4 = inlined_call_operand.vmem [shape: f32[1,128], index: 4, kind: input, shape index: {}]   ;;  %s2962_s5 = inlined_call_operand.vmem [shape: bf16[128,128], index: 5, kind: input, shape index: {}]   ;;  %s2963_s6 = inlined_call_operand.vmem [shape: f32[1,128], index: 6, kind: input, shape index: {}]   ;;  %s2964_s7 = inlined_call_operand.vmem [shape: bf16[128,128], index: 7, kind: input, shape index: {}]   ;;  %s2965_s8 = inlined_call_operand.vmem [shape: f32[1,128], index: 8, kind: input, shape index: {}]   ;;  %s2966_s9 = inlined_call_operand.vmem [shape: bf16[128,256], index: 9, kind: input, shape index: {}]   ;;  %s2967_s10 = inlined_call_operand.vmem [shape: f32[1,256], index: 10, kind: input, shape index: {}]   ;;  %s2968_s11 = inlined_call_operand.vmem [shape: bf16[256,512], index: 11, kind: input, shape index: {}]   ;;  %s2969_s12 = inlined_call_operand.vmem [shape: f32[1,512], index: 12, kind: input, shape index: {}]   ;;  %s2970_s13 = inlined_call_operand.hbm [shape: f32[8,128], index: 13, kind: output, shape index: {0}]   ;;  %s2971_s14 = inlined_call_operand.hbm [shape: f32[8,512], index: 14, kind: output, shape index: {1}]  }
   0x1   :  { %v1925_v0 = vld [vmem:[%s2958_s1 + $0x4] ss:$8 sps:$4 sm:$0xff]   ;;  %v1927_v1 = vld [vmem:[%s2958_s1] ss:$8 sps:$4 sm:$0xff]   ;;  %v1928_v2 = vld [vmem:[%s2958_s1 + $0x14] ss:$8 sps:$4 sm:$0xff]  }
   0x2   :  { %461 = vmatprep.subr.bf16.mxu0 %v1925_v0  ;;  %v1930_v3 = vld [vmem:[%s2958_s1 + $0x10] ss:$8 sps:$4 sm:$0xff]   ;;  %v1931_v4 = vld [vmem:[%s2958_s1 + $0x24] ss:$8 sps:$4 sm:$0xff]   ;;  %v1933_v5 = vld [vmem:[%s2958_s1 + $0x20] ss:$8 sps:$4 sm:$0xff]  }
   0x3   :  { %462 = vmatpush1.bf16.msra.mxu0 %v1927_v1  ;;  %v1934_v6 = vld [vmem:[%s2958_s1 + $0x34] ss:$8 sps:$4 sm:$0xff]   ;;  %v1936_v7 = vld [vmem:[%s2958_s1 + $0x30] ss:$8 sps:$4 sm:$0xff]   ;;  %v1937_v8 = vld [vmem:[%s2958_s1 + $0x44] ss:$8 sps:$4 sm:$0xff]  }
   0x4   :  { %463 = vmatprep.subr.bf16.mxu0 %v1928_v2  ;;  %v1939_v9 = vld [vmem:[%s2958_s1 + $0x40] ss:$8 sps:$4 sm:$0xff]   ;;  %v1940_v10 = vld [vmem:[%s2958_s1 + $0x54] ss:$8 sps:$4 sm:$0xff]   ;;  %v1942_v11 = vld [vmem:[%s2958_s1 + $0x50] ss:$8 sps:$4 sm:$0xff]  }
   0x5   :  { %v1943_v12 = vld [vmem:[%s2958_s1 + $0x64] ss:$8 sps:$4 sm:$0xff]   ;;  %v1945_v15 = vld [vmem:[%s2958_s1 + $0x60] ss:$8 sps:$4 sm:$0xff]   ;;  %v1946_v16 = vld [vmem:[%s2958_s1 + $0x74] ss:$8 sps:$4 sm:$0xff]  }
   0x6   :  { %v2375_v13 = vld [vmem:[%s2957_s0] sm:$0xff]  ;;  %v1948_v17 = vld [vmem:[%s2958_s1 + $0x70] ss:$8 sps:$4 sm:$0xff]   ;;  %v1952_v20 = vld [vmem:[%s2958_s1 + $0x94] ss:$8 sps:$4 sm:$0xff]  }
   0x7   :  { %464 = vmatpush1.bf16.msra.mxu0 %v1930_v3  ;;  %v1648_v14 = vcombine.high %v2375_v13, %v2375_v13  ;;  %v1949_v18 = vld [vmem:[%s2958_s1 + $0x84] ss:$8 sps:$4 sm:$0xff]   ;;  %v1951_v19 = vld [vmem:[%s2958_s1 + $0x80] ss:$8 sps:$4 sm:$0xff]   ;;  %v1954_v21 = vld [vmem:[%s2958_s1 + $0x90] ss:$8 sps:$4 sm:$0xff]   ;;  %v1647_v45 = vcombine.low %v2375_v13, %v2375_v13 }
   0x8   :  { %465 = vmatprep.subr.bf16.mxu0 %v1931_v4  ;;  %v1955_v22 = vld [vmem:[%s2958_s1 + $0xa4] ss:$8 sps:$4 sm:$0xff]   ;;  %v1957_v23 = vld [vmem:[%s2958_s1 + $0xa0] ss:$8 sps:$4 sm:$0xff]   ;;  %v1958_v24 = vld [vmem:[%s2958_s1 + $0xb4] ss:$8 sps:$4 sm:$0xff]  }
   0x9   :  { %493 = vmatprep.mubr.bf16.mxu0 %v1648_v14  ;;  %v1960_v25 = vld [vmem:[%s2958_s1 + $0xb0] ss:$8 sps:$4 sm:$0xff]   ;;  %v1961_v26 = vld [vmem:[%s2958_s1 + $0xc4] ss:$8 sps:$4 sm:$0xff]   ;;  %v1963_v28 = vld [vmem:[%s2958_s1 + $0xc0] ss:$8 sps:$4 sm:$0xff]  }
   0xa   :  { %v2025_v27 = vld [vmem:[%s2960_s3 + $0x40] sm:$0xff]   ;;  %v1964_v30 = vld [vmem:[%s2958_s1 + $0xd4] ss:$8 sps:$4 sm:$0xff]   ;;  %v2027_v31 = vld [vmem:[%s2960_s3 + $0x48] sm:$0xff]  }
   0xb   :  { %466 = vmatpush1.bf16.msra.mxu0 %v1933_v5  ;;  %v2026_v29 = vld [vmem:[%s2960_s3] sm:$0xff]   ;;  %1834 = vmatprep.subr.bf16.mxu1 %v2025_v27  ;;  %v2028_v32 = vld [vmem:[%s2960_s3 + $0x8] sm:$0xff]   ;;  %v2029_v33 = vld [vmem:[%s2960_s3 + $0x50] sm:$0xff]  }
   0xc   :  { %467 = vmatprep.subr.bf16.mxu0 %v1934_v6  ;;  %1835 = vmatpush3.bf16.msra.mxu1 %v2026_v29  ;;  %v1966_v34 = vld [vmem:[%s2958_s1 + $0xd0] ss:$8 sps:$4 sm:$0xff]   ;;  %v1967_v35 = vld [vmem:[%s2958_s1 + $0xe4] ss:$8 sps:$4 sm:$0xff]   ;;  %v1969_v38 = vld [vmem:[%s2958_s1 + $0xe0] ss:$8 sps:$4 sm:$0xff]  }
   0xd   :  { %1836 = vmatprep.subr.bf16.mxu1 %v2027_v31  ;;  %v2030_v36 = vld [vmem:[%s2960_s3 + $0x10] sm:$0xff]   ;;  %v2031_v37 = vld [vmem:[%s2960_s3 + $0x58] sm:$0xff]   ;;  %v1977_v42 = vld [vmem:[%s2958_s1 + $0x104] ss:$8 sps:$4 sm:$0xff]  }
   0xe   :  { %v2032_v39 = vld [vmem:[%s2960_s3 + $0x18] sm:$0xff]   ;;  %v2466_v43 = vld [vmem:[%s2957_s0 + $0x8] sm:$0xff] }
   0xf   :  { %468 = vmatpush1.bf16.msra.mxu0 %v1936_v7  ;;  %v1970_v40 = vld [vmem:[%s2958_s1 + $0xf4] ss:$8 sps:$4 sm:$0xff]   ;;  %v1972_v41 = vld [vmem:[%s2958_s1 + $0xf0] ss:$8 sps:$4 sm:$0xff]   ;;  %v1975_v44 = vld [vmem:[%s2958_s1 + $0x100] ss:$8 sps:$4 sm:$0xff]   ;;  %v1650_v47 = vcombine.high %v2466_v43, %v2466_v43 }
  0x10   :  { %469 = vmatprep.subr.bf16.mxu0 %v1937_v8  ;;  %1837 = vmatpush3.bf16.msra.mxu1 %v2028_v32  ;;  %v1980_v46 = vld [vmem:[%s2958_s1 + $0x114] ss:$8 sps:$4 sm:$0xff]   ;;  %v1978_v48 = vld [vmem:[%s2958_s1 + $0x110] ss:$8 sps:$4 sm:$0xff]   ;;  %v1983_v49 = vld [vmem:[%s2958_s1 + $0x124] ss:$8 sps:$4 sm:$0xff]  }
  0x11   :  { %1838 = vmatprep.subr.bf16.mxu1 %v2029_v33  ;;  %v1981_v50 = vld [vmem:[%s2958_s1 + $0x120] ss:$8 sps:$4 sm:$0xff]   ;;  %v1986_v51 = vld [vmem:[%s2958_s1 + $0x134] ss:$8 sps:$4 sm:$0xff]   ;;  %v1984_v52 = vld [vmem:[%s2958_s1 + $0x130] ss:$8 sps:$4 sm:$0xff]  }
  0x12   :  { %v1989_v53 = vld [vmem:[%s2958_s1 + $0x144] ss:$8 sps:$4 sm:$0xff]   ;;  %v1987_v54 = vld [vmem:[%s2958_s1 + $0x140] ss:$8 sps:$4 sm:$0xff]   ;;  %v1992_v55 = vld [vmem:[%s2958_s1 + $0x154] ss:$8 sps:$4 sm:$0xff]  }
  0x13   :  { %470 = vmatpush1.bf16.msra.mxu0 %v1939_v9  ;;  %v1990_v56 = vld [vmem:[%s2958_s1 + $0x150] ss:$8 sps:$4 sm:$0xff]   ;;  %v1995_v57 = vld [vmem:[%s2958_s1 + $0x164] ss:$8 sps:$4 sm:$0xff]   ;;  %v1993_v58 = vld [vmem:[%s2958_s1 + $0x160] ss:$8 sps:$4 sm:$0xff]  }
  0x14   :  { %471 = vmatprep.subr.bf16.mxu0 %v1940_v10  ;;  %1839 = vmatpush3.bf16.msra.mxu1 %v2030_v36  ;;  %v1998_v59 = vld [vmem:[%s2958_s1 + $0x174] ss:$8 sps:$4 sm:$0xff]   ;;  %v1996_v60 = vld [vmem:[%s2958_s1 + $0x170] ss:$8 sps:$4 sm:$0xff]   ;;  %v2001_v61 = vld [vmem:[%s2958_s1 + $0x184] ss:$8 sps:$4 sm:$0xff]  }
  0x15   :  { %1840 = vmatprep.subr.bf16.mxu1 %v2031_v37 }
  0x17   :  { %472 = vmatpush1.bf16.msra.mxu0 %v1942_v11 }
  0x18   :  { %473 = vmatprep.subr.bf16.mxu0 %v1943_v12  ;;  %1841 = vmatpush3.bf16.msra.mxu1 %v2032_v39 }
  0x1b   :  { %474 = vmatpush1.bf16.msra.mxu0 %v1945_v15 }
  0x1c   :  { %475 = vmatprep.subr.bf16.mxu0 %v1946_v16 }
  0x1f   :  { %476 = vmatpush1.bf16.msra.mxu0 %v1948_v17 }
  0x20   :  { %477 = vmatprep.subr.bf16.mxu0 %v1949_v18 }
  0x23   :  { %478 = vmatpush1.bf16.msra.mxu0 %v1951_v19 }
  0x24   :  { %479 = vmatprep.subr.bf16.mxu0 %v1952_v20 }
  0x27   :  { %480 = vmatpush1.bf16.msra.mxu0 %v1954_v21 }
  0x28   :  { %481 = vmatprep.subr.bf16.mxu0 %v1955_v22 }
  0x2b   :  { %482 = vmatpush1.bf16.msra.mxu0 %v1957_v23 }
  0x2c   :  { %483 = vmatprep.subr.bf16.mxu0 %v1958_v24 }
  0x2f   :  { %484 = vmatpush1.bf16.msra.mxu0 %v1960_v25 }
  0x30   :  { %485 = vmatprep.subr.bf16.mxu0 %v1961_v26 }
  0x33   :  { %486 = vmatpush1.bf16.msra.mxu0 %v1963_v28 }
  0x34   :  { %487 = vmatprep.subr.bf16.mxu0 %v1964_v30 }
  0x37   :  { %488 = vmatpush1.bf16.msra.mxu0 %v1966_v34 }
  0x38   :  { %489 = vmatprep.subr.bf16.mxu0 %v1967_v35 }
  0x3b   :  { %490 = vmatpush1.bf16.msra.mxu0 %v1969_v38 }
  0x3c   :  { %491 = vmatprep.subr.bf16.mxu0 %v1970_v40 }
  0x3f   :  { %492 = vmatpush1.bf16.msra.mxu0 %v1972_v41 }
  0x40   :  { %502 = vmatprep.subr.bf16.mxu0 %v1977_v42 }
  0x42   :  { %494 = vmatmul.mubr.bf16.vlgmr.msra.gmra.mrb[0].mxu0 %v1647_v45 }
  0x43   :  { %503 = vmatpush1.bf16.msra.mxu0 %v1975_v44  ;;  %534 = vmatprep.mubr.bf16.mxu0 %v1650_v47 }
  0x44   :  { %504 = vmatprep.subr.bf16.mxu0 %v1980_v46 }
  0x47   :  { %505 = vmatpush1.bf16.msra.mxu0 %v1978_v48 }
  0x48   :  { %506 = vmatprep.subr.bf16.mxu0 %v1983_v49 }
  0x4b   :  { %507 = vmatpush1.bf16.msra.mxu0 %v1981_v50 }
  0x4c   :  { %508 = vmatprep.subr.bf16.mxu0 %v1986_v51 }
  0x4f   :  { %509 = vmatpush1.bf16.msra.mxu0 %v1984_v52 }
  0x50   :  { %510 = vmatprep.subr.bf16.mxu0 %v1989_v53 }
  0x53   :  { %511 = vmatpush1.bf16.msra.mxu0 %v1987_v54 }
  0x54   :  { %512 = vmatprep.subr.bf16.mxu0 %v1992_v55 }
  0x57   :  { %513 = vmatpush1.bf16.msra.mxu0 %v1990_v56 }
  0x58   :  { %514 = vmatprep.subr.bf16.mxu0 %v1995_v57 }
  0x5b   :  { %515 = vmatpush1.bf16.msra.mxu0 %v1993_v58 }
  0x5c   :  { %516 = vmatprep.subr.bf16.mxu0 %v1998_v59 }
  0x5d   :  { %21 = vsyncpa [#allocation5], 0  ;;  %v1999_v62 = vld [vmem:[%s2958_s1 + $0x180] ss:$8 sps:$4 sm:$0xff]   ;;  %v2004_v63 = vld [vmem:[%s2958_s1 + $0x194] ss:$8 sps:$4 sm:$0xff]   ;;  %v1649_v13 = vcombine.low %v2466_v43, %v2466_v43  ;;  %v117_v23 = vlaneseq }
  0x5e   :  { %v2002_v0 = vld [vmem:[%s2958_s1 + $0x190] ss:$8 sps:$4 sm:$0xff]   ;;  %v2007_v1 = vld [vmem:[%s2958_s1 + $0x1a4] ss:$8 sps:$4 sm:$0xff]   ;;  %v2005_v2 = vld [vmem:[%s2958_s1 + $0x1a0] ss:$8 sps:$4 sm:$0xff]  }
  0x5f   :  { %517 = vmatpush1.bf16.msra.mxu0 %v1996_v60  ;;  %v2010_v3 = vld [vmem:[%s2958_s1 + $0x1b4] ss:$8 sps:$4 sm:$0xff]   ;;  %v2008_v4 = vld [vmem:[%s2958_s1 + $0x1b0] ss:$8 sps:$4 sm:$0xff]   ;;  %v2013_v5 = vld [vmem:[%s2958_s1 + $0x1c4] ss:$8 sps:$4 sm:$0xff]  }
  0x60   :  { %518 = vmatprep.subr.bf16.mxu0 %v2001_v61  ;;  %v2011_v6 = vld [vmem:[%s2958_s1 + $0x1c0] ss:$8 sps:$4 sm:$0xff]   ;;  %v2016_v7 = vld [vmem:[%s2958_s1 + $0x1d4] ss:$8 sps:$4 sm:$0xff]   ;;  %v2014_v8 = vld [vmem:[%s2958_s1 + $0x1d0] ss:$8 sps:$4 sm:$0xff]  }
  0x61   :  { %v2019_v9 = vld [vmem:[%s2958_s1 + $0x1e4] ss:$8 sps:$4 sm:$0xff]   ;;  %v2017_v10 = vld [vmem:[%s2958_s1 + $0x1e0] ss:$8 sps:$4 sm:$0xff]   ;;  %v2022_v11 = vld [vmem:[%s2958_s1 + $0x1f4] ss:$8 sps:$4 sm:$0xff]  }
  0x62   :  { %v2020_v12 = vld [vmem:[%s2958_s1 + $0x1f0] ss:$8 sps:$4 sm:$0xff]   ;;  %v2033_v14 = vld [vmem:[%s2960_s3 + $0x60] sm:$0xff]   ;;  %v2035_v16 = vld [vmem:[%s2960_s3 + $0x68] sm:$0xff]   ;;  %v2253_v22 = vmov 0.0   ;;  %v2592_v24 = vshrl.u32 %v117_v23, 7 }
  0x63   :  { %519 = vmatpush1.bf16.msra.mxu0 %v1999_v62  ;;  %v2034_v15 = vld [vmem:[%s2960_s3 + $0x20] sm:$0xff]   ;;  %1842 = vmatprep.subr.bf16.mxu1 %v2033_v14  ;;  %v2036_v17 = vld [vmem:[%s2960_s3 + $0x28] sm:$0xff]   ;;  %v2037_v18 = vld [vmem:[%s2960_s3 + $0x70] sm:$0xff]   ;;  %vm2254_vm0 = vmmov 0  }
  0x64   :  { %520 = vmatprep.subr.bf16.mxu0 %v2004_v63  ;;  %1843 = vmatpush3.bf16.msra.mxu1 %v2034_v15  ;;  %v2038_v19 = vld [vmem:[%s2960_s3 + $0x30] sm:$0xff]   ;;  %v2039_v20 = vld [vmem:[%s2960_s3 + $0x78] sm:$0xff]   ;;  %v2595_v25 = vsub.s32 0, %v2592_v24  ;;  %v115_v26 = vld [vmem:[%s2959_s2] sm:$0x3]  ;;  %v2601_v27 = vsub.s32 1, %v2592_v24 }
  0x65   :  { %1844 = vmatprep.subr.bf16.mxu1 %v2035_v16  ;;  %v2040_v21 = vld [vmem:[%s2960_s3 + $0x38] sm:$0xff]   ;;  %v2041_v39 = vld [vmem:[%s2962_s5] sm:$0xff]   ;;  %v2042_v41 = vld [vmem:[%s2962_s5 + $0x8] sm:$0xff]  }
  0x66   :  { %v120_v28 = vrot.slane %v115_v26, %v2595_v25  ;;  %v124_v29 = vrot.slane %v115_v26, %v2601_v27  ;;  %v2043_v42 = vld [vmem:[%s2962_s5 + $0x10] sm:$0xff]   ;;  %v2044_v43 = vld [vmem:[%s2962_s5 + $0x18] sm:$0xff]   ;;  %v2045_v44 = vld [vmem:[%s2962_s5 + $0x20] sm:$0xff]   ;;  %v2255_v26 = vmov 0  }
  0x67   :  { %521 = vmatpush1.bf16.msra.mxu0 %v2002_v0  ;;  %v2046_v45 = vld [vmem:[%s2962_s5 + $0x28] sm:$0xff]   ;;  %v2047_v46 = vld [vmem:[%s2962_s5 + $0x30] sm:$0xff]   ;;  %v2048_v47 = vld [vmem:[%s2962_s5 + $0x38] sm:$0xff]  }
  0x68   :  { %522 = vmatprep.subr.bf16.mxu0 %v2007_v1  ;;  %1845 = vmatpush3.bf16.msra.mxu1 %v2036_v17  ;;  %v1715_v49 = vld [vmem:[%s2961_s4] ss:$0 sm:$0xff]  ;;  %v2050_v58 = vld [vmem:[%s2964_s7 + $0x8] sm:$0xff]   ;;  %v2051_v59 = vld [vmem:[%s2964_s7 + $0x10] sm:$0xff]  }
  0x69   :  { %1846 = vmatprep.subr.bf16.mxu1 %v2037_v18  ;;  %v2049_v56 = vld [vmem:[%s2964_s7] sm:$0xff]   ;;  %v2052_v60 = vld [vmem:[%s2964_s7 + $0x18] sm:$0xff]   ;;  %v2054_v62 = vld [vmem:[%s2964_s7 + $0x28] sm:$0xff]  }
  0x6a   :  { %v2053_v61 = vld [vmem:[%s2964_s7 + $0x20] sm:$0xff]   ;;  %v2055_v63 = vld [vmem:[%s2964_s7 + $0x30] sm:$0xff]   ;;  %v2056_v0 = vld [vmem:[%s2964_s7 + $0x38] sm:$0xff]  }
  0x6b   :  { %523 = vmatpush1.bf16.msra.mxu0 %v2005_v2  ;;  %v2059_v1 = vld [vmem:[%s2966_s9 + $0x4] ss:$8 sps:$4 sm:$0xff]   ;;  %v1732_v2 = vld [vmem:[%s2963_s6] ss:$0 sm:$0xff]  ;;  %v2068_v14 = vld [vmem:[%s2966_s9 + $0x34] ss:$8 sps:$4 sm:$0xff]  }
  0x6c   :  { %524 = vmatprep.subr.bf16.mxu0 %v2010_v3  ;;  %1847 = vmatpush3.bf16.msra.mxu1 %v2038_v19  ;;  %v2066_v15 = vld [vmem:[%s2966_s9 + $0x30] ss:$8 sps:$4 sm:$0xff]   ;;  %v2071_v16 = vld [vmem:[%s2966_s9 + $0x44] ss:$8 sps:$4 sm:$0xff]   ;;  %v2069_v17 = vld [vmem:[%s2966_s9 + $0x40] ss:$8 sps:$4 sm:$0xff]  }
  0x6d   :  { %1848 = vmatprep.subr.bf16.mxu1 %v2039_v20  ;;  %v2074_v18 = vld [vmem:[%s2966_s9 + $0x54] ss:$8 sps:$4 sm:$0xff]   ;;  %v2072_v19 = vld [vmem:[%s2966_s9 + $0x50] ss:$8 sps:$4 sm:$0xff]   ;;  %v2077_v20 = vld [vmem:[%s2966_s9 + $0x64] ss:$8 sps:$4 sm:$0xff]  }
  0x6e   :  { %v2078_v23 = vld [vmem:[%s2966_s9 + $0x70] ss:$8 sps:$4 sm:$0xff]  }
  0x6f   :  { %525 = vmatpush1.bf16.msra.mxu0 %v2008_v4 }
  0x70   :  { %526 = vmatprep.subr.bf16.mxu0 %v2013_v5  ;;  %1849 = vmatpush3.bf16.msra.mxu1 %v2040_v21  ;;  %v2075_v21 = vld [vmem:[%s2966_s9 + $0x60] ss:$8 sps:$4 sm:$0xff]  }
  0x71   :  { %1874 = vmatprep.subr.bf16.mxu1 %v2253_v22 }
  0x73   :  { %527 = vmatpush1.bf16.msra.mxu0 %v2011_v6 }
  0x74   :  { %528 = vmatprep.subr.bf16.mxu0 %v2016_v7  ;;  %v2057_v7 = vld [vmem:[%s2966_s9] ss:$8 sps:$4 sm:$0xff]  }
  0x77   :  { %529 = vmatpush1.bf16.msra.mxu0 %v2014_v8 }
  0x78   :  { %530 = vmatprep.subr.bf16.mxu0 %v2019_v9 }
  0x7b   :  { %531 = vmatpush1.bf16.msra.mxu0 %v2017_v10  ;;  %v2062_v10 = vld [vmem:[%s2966_s9 + $0x14] ss:$8 sps:$4 sm:$0xff]  }
  0x7c   :  { %532 = vmatprep.subr.bf16.mxu0 %v2022_v11  ;;  %v2060_v11 = vld [vmem:[%s2966_s9 + $0x10] ss:$8 sps:$4 sm:$0xff]  }
  0x7f   :  { %533 = vmatpush1.bf16.msra.mxu0 %v2020_v12  ;;  %v2065_v12 = vld [vmem:[%s2966_s9 + $0x24] ss:$8 sps:$4 sm:$0xff]  }
  0x82   :  { %535 = vmatmul.mubr.bf16.vlgmr.msra.gmra.mrb[0].mxu0 %v1649_v13  ;;  %v2063_v13 = vld [vmem:[%s2966_s9 + $0x20] ss:$8 sps:$4 sm:$0xff]  }
 0x155   :  { %v536_v30 = vpop.f32.mrb[0].mxu0 }
 0x156   :  { %v1914_v31 = vadd.f32 %v536_v30, %v120_v28  ;;  %v538_v32 = vpop.f32.mrb[1].mxu0  ;;  %v2081_v28 = vld [vmem:[%s2968_s11] ss:$16 sps:$4 sm:$0xff]   ;;  %v2086_v30 = vld [vmem:[%s2968_s11 + $0xc] ss:$16 sps:$4 sm:$0xff]  }
 0x157   :  { %v1915_v33 = vadd.f32 %v538_v32, %v124_v29  ;;  %v540_v34 = vpop.f32.mrb[2].mxu0  ;;  %v2083_v29 = vld [vmem:[%s2968_s11 + $0x4] ss:$16 sps:$4 sm:$0xff]   ;;  %v2087_v32 = vld [vmem:[%s2968_s11 + $0x20] ss:$16 sps:$4 sm:$0xff]  }
 0x158   :  { %2177 = vtanh.f32 %v1914_v31  ;;  %v541_v35 = vpop.f32.mrb[3].mxu0  ;;  %v2089_v31 = vld [vmem:[%s2968_s11 + $0x24] ss:$16 sps:$4 sm:$0xff]   ;;  %1508 = vmatprep.subr.bf16.mxu0 %v2083_v29  ;;  %v2093_v34 = vld [vmem:[%s2968_s11 + $0x40] ss:$16 sps:$4 sm:$0xff]  }
 0x159   :  { %2179 = vtanh.f32 %v1915_v33  ;;  %1509 = vmatpush1.bf16.msra.mxu0 %v2081_v28  ;;  %v2095_v33 = vld [vmem:[%s2968_s11 + $0x44] ss:$16 sps:$4 sm:$0xff]   ;;  %v2164_v28 = vld [vmem:[%s2968_s11 + $0x1ac] ss:$16 sps:$4 sm:$0xff]   ;;  %v2159_v29 = vld [vmem:[%s2968_s11 + $0x1a0] ss:$16 sps:$4 sm:$0xff]  }
 0x15a   :  { %1510 = vmatprep.subr.bf16.mxu0 %v2089_v31  ;;  %v2101_v35 = vld [vmem:[%s2968_s11 + $0x64] ss:$16 sps:$4 sm:$0xff]  }
 0x15b   :  { %v2167_v31 = vld [vmem:[%s2968_s11 + $0x1c4] ss:$16 sps:$4 sm:$0xff]  }
 0x15d   :  { %1511 = vmatpush1.bf16.msra.mxu0 %v2087_v32  ;;  %v2170_v32 = vld [vmem:[%s2968_s11 + $0x1cc] ss:$16 sps:$4 sm:$0xff]  }
 0x15e   :  { %1512 = vmatprep.subr.bf16.mxu0 %v2095_v33  ;;  %v2165_v33 = vld [vmem:[%s2968_s11 + $0x1c0] ss:$16 sps:$4 sm:$0xff]  }
 0x161   :  { %1513 = vmatpush1.bf16.msra.mxu0 %v2093_v34  ;;  %v2168_v34 = vld [vmem:[%s2968_s11 + $0x1c8] ss:$16 sps:$4 sm:$0xff]  }
 0x162   :  { %v2178_v36 = vpop.eup %2177  ;;  %1514 = vmatprep.subr.bf16.mxu0 %v2101_v35  ;;  %v2173_v35 = vld [vmem:[%s2968_s11 + $0x1e4] ss:$16 sps:$4 sm:$0xff]  }
 0x163   :  { %v2180_v37 = vpop.eup %2179  ;;  %v545_v40 = vpack.c.bf16 %v2178_v36, %v2178_v36  ;;  %v2099_v36 = vld [vmem:[%s2968_s11 + $0x60] ss:$16 sps:$4 sm:$0xff]  }
 0x164   :  { %v546_v38 = vpack.c.bf16 %v2180_v37, %v2180_v37  ;;  %v2107_v37 = vld [vmem:[%s2968_s11 + $0x84] ss:$16 sps:$4 sm:$0xff]  }
 0x165   :  { %1515 = vmatpush1.bf16.msra.mxu0 %v2099_v36  ;;  %v2176_v36 = vld [vmem:[%s2968_s11 + $0x1ec] ss:$16 sps:$4 sm:$0xff]  }
 0x166   :  { %714 = vmatprep.mubr.bf16.mxu1 %v546_v38  ;;  %v2105_v38 = vld [vmem:[%s2968_s11 + $0x80] ss:$16 sps:$4 sm:$0xff]   ;;  %1516 = vmatprep.subr.bf16.mxu0 %v2107_v37 }
 0x167   :  { %715 = vmatmul.mubr.bf16.vlgmr.msra.gmra.mrb[0].mxu1 %v545_v40  ;;  %v2111_v40 = vld [vmem:[%s2968_s11 + $0xa0] ss:$16 sps:$4 sm:$0xff]  }
 0x168   :  { %1875 = vmatpush3.bf16.msra.mxu1 %v2041_v39  ;;  %1890 = vmatprep.mubr.msk.bf16.mxu1 %vm2254_vm0, %v2253_v22  ;;  %v2113_v39 = vld [vmem:[%s2968_s11 + $0xa4] ss:$16 sps:$4 sm:$0xff]   ;;  %v2171_v37 = vld [vmem:[%s2968_s11 + $0x1e0] ss:$16 sps:$4 sm:$0xff]  }
 0x169   :  { %1876 = vmatprep.subr.bf16.mxu1 %v2253_v22  ;;  %1517 = vmatpush1.bf16.msra.mxu0 %v2105_v38  ;;  %v2174_v38 = vld [vmem:[%s2968_s11 + $0x1e8] ss:$16 sps:$4 sm:$0xff]  }
 0x16a   :  { %1518 = vmatprep.subr.bf16.mxu0 %v2113_v39  ;;  %v965_v39 = vld [vmem:[%s2967_s10] sm:$0x3]  ;;  %s2256_s10 = smov [#allocation2]  }
 0x16c   :  { %1877 = vmatpush3.bf16.msra.mxu1 %v2042_v41  ;;  %v2119_v41 = vld [vmem:[%s2968_s11 + $0xc4] ss:$16 sps:$4 sm:$0xff]  }
 0x16d   :  { %1878 = vmatprep.subr.bf16.mxu1 %v2253_v22  ;;  %1519 = vmatpush1.bf16.msra.mxu0 %v2111_v40  ;;  %v970_v40 = vrot.slane %v965_v39, %v2595_v25 }
 0x16e   :  { %1520 = vmatprep.subr.bf16.mxu0 %v2119_v41  ;;  %v974_v41 = vrot.slane %v965_v39, %v2601_v27 }
 0x170   :  { %1879 = vmatpush3.bf16.msra.mxu1 %v2043_v42  ;;  %v2117_v42 = vld [vmem:[%s2968_s11 + $0xc0] ss:$16 sps:$4 sm:$0xff]  }
 0x171   :  { %1880 = vmatprep.subr.bf16.mxu1 %v2253_v22  ;;  %1521 = vmatpush1.bf16.msra.mxu0 %v2117_v42 }
 0x174   :  { %1881 = vmatpush3.bf16.msra.mxu1 %v2044_v43  ;;  %v2125_v43 = vld [vmem:[%s2968_s11 + $0xe4] ss:$16 sps:$4 sm:$0xff]  }
 0x175   :  { %1882 = vmatprep.subr.bf16.mxu1 %v2253_v22  ;;  %1522 = vmatprep.subr.bf16.mxu0 %v2125_v43 }
 0x178   :  { %1883 = vmatpush3.bf16.msra.mxu1 %v2045_v44  ;;  %v2123_v44 = vld [vmem:[%s2968_s11 + $0xe0] ss:$16 sps:$4 sm:$0xff]  }
 0x179   :  { %1884 = vmatprep.subr.bf16.mxu1 %v2253_v22  ;;  %1523 = vmatpush1.bf16.msra.mxu0 %v2123_v44 }
 0x17c   :  { %1885 = vmatpush3.bf16.msra.mxu1 %v2046_v45  ;;  %v2131_v45 = vld [vmem:[%s2968_s11 + $0x104] ss:$16 sps:$4 sm:$0xff]  }
 0x17d   :  { %1886 = vmatprep.subr.bf16.mxu1 %v2253_v22  ;;  %1524 = vmatprep.subr.bf16.mxu0 %v2131_v45 }
 0x180   :  { %1887 = vmatpush3.bf16.msra.mxu1 %v2047_v46  ;;  %v2129_v46 = vld [vmem:[%s2968_s11 + $0x100] ss:$16 sps:$4 sm:$0xff]  }
 0x181   :  { %1888 = vmatprep.subr.bf16.mxu1 %v2253_v22  ;;  %1525 = vmatpush1.bf16.msra.mxu0 %v2129_v46 }
 0x184   :  { %1889 = vmatpush3.bf16.msra.mxu1 %v2048_v47  ;;  %v2137_v47 = vld [vmem:[%s2968_s11 + $0x124] ss:$16 sps:$4 sm:$0xff]  }
 0x185   :  { %1894 = vmatprep.subr.bf16.mxu1 %v2253_v22  ;;  %1526 = vmatprep.subr.bf16.mxu0 %v2137_v47 }
 0x23a   :  { %v1850_v48 = vpop.f32.mrb[0].mxu1 }
 0x23b   :  { %v1851_v50 = vpop.f32.mrb[1].mxu1 }
 0x23c   :  { %v1852_v51 = vadd.f32 %v1851_v50, %v1850_v48  ;;  %v1853_v52 = vpop.f32.mrb[2].mxu1  ;;  %v2135_v48 = vld [vmem:[%s2968_s11 + $0x120] ss:$16 sps:$4 sm:$0xff]  }
 0x23d   :  { %v1854_v53 = vpop.f32.mrb[3].mxu1  ;;  %1527 = vmatpush1.bf16.msra.mxu0 %v2135_v48  ;;  %v2141_v50 = vld [vmem:[%s2968_s11 + $0x140] ss:$16 sps:$4 sm:$0xff]  }
 0x23e   :  { %v717_v54 = vadd.f32 %v1852_v51, %v1715_v49  ;;  %v2143_v49 = vld [vmem:[%s2968_s11 + $0x144] ss:$16 sps:$4 sm:$0xff]   ;;  %v2147_v52 = vld [vmem:[%s2968_s11 + $0x160] ss:$16 sps:$4 sm:$0xff]  }
 0x23f   :  { %1528 = vmatprep.subr.bf16.mxu0 %v2143_v49  ;;  %v2149_v51 = vld [vmem:[%s2968_s11 + $0x164] ss:$16 sps:$4 sm:$0xff]   ;;  %v1741_v53 = vld [vmem:[%s2965_s8] ss:$0 sm:$0xff] }
 0x240   :  { %2181 = vtanh.f32 %v717_v54 }
 0x241   :  { %1529 = vmatpush1.bf16.msra.mxu0 %v2141_v50 }
 0x242   :  { %1530 = vmatprep.subr.bf16.mxu0 %v2149_v51 }
 0x245   :  { %1531 = vmatpush1.bf16.msra.mxu0 %v2147_v52 }
 0x24a   :  { %v2182_v55 = vpop.eup %2181 }
 0x24b   :  { %v723_v57 = vpack.c.bf16 %v2182_v55, %v2182_v55 }
 0x24d   :  { %1891 = vmatmul.mubr.bf16.vlgmr.msra.gmra.mrb[4].mxu1 %v723_v57 }
 0x24e   :  { %1895 = vmatpush3.bf16.msra.mxu1 %v2049_v56  ;;  %1910 = vmatprep.mubr.msk.bf16.mxu1 %vm2254_vm0, %v2253_v22 }
 0x24f   :  { %1896 = vmatprep.subr.bf16.mxu1 %v2253_v22 }
 0x252   :  { %1897 = vmatpush3.bf16.msra.mxu1 %v2050_v58 }
 0x253   :  { %1898 = vmatprep.subr.bf16.mxu1 %v2253_v22 }
 0x256   :  { %1899 = vmatpush3.bf16.msra.mxu1 %v2051_v59 }
 0x257   :  { %1900 = vmatprep.subr.bf16.mxu1 %v2253_v22 }
 0x25a   :  { %1901 = vmatpush3.bf16.msra.mxu1 %v2052_v60  ;;  %v2084_v60 = vld [vmem:[%s2968_s11 + $0x8] ss:$16 sps:$4 sm:$0xff]  }
 0x25b   :  { %1902 = vmatprep.subr.bf16.mxu1 %v2253_v22 }
 0x25e   :  { %1903 = vmatpush3.bf16.msra.mxu1 %v2053_v61 }
 0x25f   :  { %1904 = vmatprep.subr.bf16.mxu1 %v2253_v22 }
 0x262   :  { %1905 = vmatpush3.bf16.msra.mxu1 %v2054_v62  ;;  %v2092_v62 = vld [vmem:[%s2968_s11 + $0x2c] ss:$16 sps:$4 sm:$0xff]  }
 0x263   :  { %1906 = vmatprep.subr.bf16.mxu1 %v2253_v22 }
 0x266   :  { %1907 = vmatpush3.bf16.msra.mxu1 %v2055_v63  ;;  %v2090_v63 = vld [vmem:[%s2968_s11 + $0x28] ss:$16 sps:$4 sm:$0xff]  }
 0x267   :  { %1908 = vmatprep.subr.bf16.mxu1 %v2253_v22  ;;  %v2080_v22 = vld [vmem:[%s2966_s9 + $0x74] ss:$8 sps:$4 sm:$0xff]  }
 0x26a   :  { %1909 = vmatpush3.bf16.msra.mxu1 %v2056_v0  ;;  %v2098_v0 = vld [vmem:[%s2968_s11 + $0x4c] ss:$16 sps:$4 sm:$0xff]  }
 0x26b   :  { %1057 = vmatprep.subr.bf16.mxu1 %v2059_v1  ;;  %v2096_v1 = vld [vmem:[%s2968_s11 + $0x48] ss:$16 sps:$4 sm:$0xff]  }
 0x320   :  { %v829_v3 = vpop.f32.mrb[4].mxu1 }
 0x321   :  { %v830_v4 = vadd.f32 %v1732_v2, %v829_v3  ;;  %v1892_v5 = vpop.f32.mrb[5].mxu1  ;;  %v2104_v2 = vld [vmem:[%s2968_s11 + $0x6c] ss:$16 sps:$4 sm:$0xff]   ;;  %v2102_v3 = vld [vmem:[%s2968_s11 + $0x68] ss:$16 sps:$4 sm:$0xff]  }
 0x322   :  { %v832_v6 = vpop.f32.mrb[6].mxu1  ;;  %v2108_v5 = vld [vmem:[%s2968_s11 + $0x88] ss:$16 sps:$4 sm:$0xff]  }
 0x323   :  { %v835_v8 = vpack.c.bf16 %v830_v4, %v830_v4  ;;  %1614 = vst [vmem:[#allocation2] sm:$0xff] %v830_v4  ;;  %v1893_v9 = vpop.f32.mrb[7].mxu1  ;;  %v2110_v4 = vld [vmem:[%s2968_s11 + $0x8c] ss:$16 sps:$4 sm:$0xff]  }
 0x324   :  { %v2116_v6 = vld [vmem:[%s2968_s11 + $0xac] ss:$16 sps:$4 sm:$0xff]   ;;  %v2120_v9 = vld [vmem:[%s2968_s11 + $0xc8] ss:$16 sps:$4 sm:$0xff]  }
 0x325   :  { %1911 = vmatmul.mubr.bf16.vlgmr.msra.gmra.mrb[8].mxu1 %v835_v8  ;;  %v2122_v8 = vld [vmem:[%s2968_s11 + $0xcc] ss:$16 sps:$4 sm:$0xff]  }
 0x326   :  { %1058 = vmatpush1.bf16.msra.mxu1 %v2057_v7  ;;  %1089 = vmatprep.mubr.bf16.mxu1 %v2255_v26  ;;  %v2114_v7 = vld [vmem:[%s2968_s11 + $0xa8] ss:$16 sps:$4 sm:$0xff]   ;;  %v2161_v26 = vld [vmem:[%s2968_s11 + $0x1a4] ss:$16 sps:$4 sm:$0xff]  }
 0x327   :  { %1059 = vmatprep.subr.bf16.mxu1 %v2062_v10  ;;  %v2128_v10 = vld [vmem:[%s2968_s11 + $0xec] ss:$16 sps:$4 sm:$0xff]  }
 0x32a   :  { %1060 = vmatpush1.bf16.msra.mxu1 %v2060_v11  ;;  %v2126_v11 = vld [vmem:[%s2968_s11 + $0xe8] ss:$16 sps:$4 sm:$0xff]  }
 0x32b   :  { %1061 = vmatprep.subr.bf16.mxu1 %v2065_v12  ;;  %v2134_v12 = vld [vmem:[%s2968_s11 + $0x10c] ss:$16 sps:$4 sm:$0xff]  }
 0x32e   :  { %1062 = vmatpush1.bf16.msra.mxu1 %v2063_v13  ;;  %v2132_v13 = vld [vmem:[%s2968_s11 + $0x108] ss:$16 sps:$4 sm:$0xff]  }
 0x32f   :  { %1063 = vmatprep.subr.bf16.mxu1 %v2068_v14  ;;  %v2140_v14 = vld [vmem:[%s2968_s11 + $0x12c] ss:$16 sps:$4 sm:$0xff]  }
 0x332   :  { %1064 = vmatpush1.bf16.msra.mxu1 %v2066_v15  ;;  %v2138_v15 = vld [vmem:[%s2968_s11 + $0x128] ss:$16 sps:$4 sm:$0xff]  }
 0x333   :  { %1065 = vmatprep.subr.bf16.mxu1 %v2071_v16  ;;  %v2146_v16 = vld [vmem:[%s2968_s11 + $0x14c] ss:$16 sps:$4 sm:$0xff]  }
 0x336   :  { %1066 = vmatpush1.bf16.msra.mxu1 %v2069_v17  ;;  %v2144_v17 = vld [vmem:[%s2968_s11 + $0x148] ss:$16 sps:$4 sm:$0xff]  }
 0x337   :  { %1067 = vmatprep.subr.bf16.mxu1 %v2074_v18  ;;  %v2152_v18 = vld [vmem:[%s2968_s11 + $0x16c] ss:$16 sps:$4 sm:$0xff]  }
 0x33a   :  { %1068 = vmatpush1.bf16.msra.mxu1 %v2072_v19  ;;  %v2150_v19 = vld [vmem:[%s2968_s11 + $0x168] ss:$16 sps:$4 sm:$0xff]  }
 0x33b   :  { %1069 = vmatprep.subr.bf16.mxu1 %v2077_v20  ;;  %v2155_v20 = vld [vmem:[%s2968_s11 + $0x184] ss:$16 sps:$4 sm:$0xff]  }
 0x33c   :  { %1532 = vmatprep.subr.bf16.mxu0 %v2155_v20 }
 0x33e   :  { %1070 = vmatpush1.bf16.msra.mxu1 %v2075_v21  ;;  %v2158_v21 = vld [vmem:[%s2968_s11 + $0x18c] ss:$16 sps:$4 sm:$0xff]  }
 0x33f   :  { %1071 = vmatprep.subr.bf16.mxu1 %v2080_v22  ;;  %v2153_v22 = vld [vmem:[%s2968_s11 + $0x180] ss:$16 sps:$4 sm:$0xff]  }
 0x340   :  { %1533 = vmatpush1.bf16.msra.mxu0 %v2153_v22 }
 0x341   :  { %1534 = vmatprep.subr.bf16.mxu0 %v2161_v26 }
 0x342   :  { %1072 = vmatpush1.bf16.msra.mxu1 %v2078_v23  ;;  %v2156_v23 = vld [vmem:[%s2968_s11 + $0x188] ss:$16 sps:$4 sm:$0xff]  }
 0x343   :  { %1549 = vmatprep.subr.bf16.mxu1 %v2086_v30  ;;  %v2162_v30 = vld [vmem:[%s2968_s11 + $0x1a8] ss:$16 sps:$4 sm:$0xff]   ;;  %s1625_s11 = sshll.u32 %s2256_s10, 4  ;;  %s1626_s11 = int_to_ptr.vmem [resolvable:$true] %s1625_s11 }
 0x344   :  { %1535 = vmatpush1.bf16.msra.mxu0 %v2159_v29  ;;  %s2205_s29 = scalar_lea.vmem %s1626_s11, 128  ;;  %p2210_p1 = scmp.lt.s32.totalorder %s1626_s11, %s1626_s11 }
 0x345   :  { %1536 = vmatprep.subr.bf16.mxu0 %v2167_v31  ;;  %p2206_p0 = scmp.ne.s32.totalorder %s1626_s11, %s2205_s29  ;;  %p2211_p2 = scmp.lt.s32.totalorder %s2205_s29, %s2205_s29 }
 0x347   :  { %p2212_p3 = por %p2211_p2, %p2210_p1 }
 0x348   :  { %1537 = vmatpush1.bf16.msra.mxu0 %v2165_v33 }
 0x349   :  { %1538 = vmatprep.subr.bf16.mxu0 %v2173_v35  ;;  %p2213_p4 = pnand %p2212_p3, %p2206_p0 }
 0x34c   :  { %1539 = vmatpush1.bf16.msra.mxu0 %v2171_v37 }
 0x3f8   :  { %v941_v54 = vpop.f32.mrb[8].mxu1 }
 0x3f9   :  { %v942_v55 = vadd.f32 %v1741_v53, %v941_v54  ;;  %v1912_v56 = vpop.f32.mrb[9].mxu1 }
 0x3fa   :  { %v944_v57 = vpop.f32.mrb[10].mxu1 }
 0x3fb   :  { %2183 = vtanh.f32 %v942_v55  ;;  %v1913_v58 = vpop.f32.mrb[11].mxu1 }
 0x405   :  { %v2184_v59 = vpop.eup %2183 }
 0x406   :  { %v948_v61 = vpack.c.bf16 %v2184_v59, %v2184_v59 }
 0x408   :  { %1090 = vmatmul.mubr.bf16.vlgmr.msra.gmra.mrb[12].mxu1 %v948_v61 }
 0x409   :  { %1550 = vmatpush1.bf16.msra.mxu1 %v2084_v60 }
 0x40a   :  { %1551 = vmatprep.subr.bf16.mxu1 %v2092_v62 }
 0x40d   :  { %1552 = vmatpush1.bf16.msra.mxu1 %v2090_v63 }
 0x40e   :  { %1553 = vmatprep.subr.bf16.mxu1 %v2098_v0 }
 0x411   :  { %1554 = vmatpush1.bf16.msra.mxu1 %v2096_v1 }
 0x412   :  { %1555 = vmatprep.subr.bf16.mxu1 %v2104_v2 }
 0x415   :  { %1556 = vmatpush1.bf16.msra.mxu1 %v2102_v3 }
 0x416   :  { %1557 = vmatprep.subr.bf16.mxu1 %v2110_v4 }
 0x419   :  { %1558 = vmatpush1.bf16.msra.mxu1 %v2108_v5 }
 0x41a   :  { %1559 = vmatprep.subr.bf16.mxu1 %v2116_v6 }
 0x41d   :  { %1560 = vmatpush1.bf16.msra.mxu1 %v2114_v7 }
 0x41e   :  { %1561 = vmatprep.subr.bf16.mxu1 %v2122_v8 }
 0x421   :  { %1562 = vmatpush1.bf16.msra.mxu1 %v2120_v9 }
 0x422   :  { %1563 = vmatprep.subr.bf16.mxu1 %v2128_v10 }
 0x425   :  { %1564 = vmatpush1.bf16.msra.mxu1 %v2126_v11 }
 0x426   :  { %1565 = vmatprep.subr.bf16.mxu1 %v2134_v12 }
 0x429   :  { %1566 = vmatpush1.bf16.msra.mxu1 %v2132_v13 }
 0x42a   :  { %1567 = vmatprep.subr.bf16.mxu1 %v2140_v14 }
 0x42d   :  { %1568 = vmatpush1.bf16.msra.mxu1 %v2138_v15 }
 0x42e   :  { %1569 = vmatprep.subr.bf16.mxu1 %v2146_v16 }
 0x431   :  { %1570 = vmatpush1.bf16.msra.mxu1 %v2144_v17 }
 0x432   :  { %1571 = vmatprep.subr.bf16.mxu1 %v2152_v18 }
 0x435   :  { %1572 = vmatpush1.bf16.msra.mxu1 %v2150_v19 }
 0x436   :  { %1573 = vmatprep.subr.bf16.mxu1 %v2158_v21 }
 0x439   :  { %1574 = vmatpush1.bf16.msra.mxu1 %v2156_v23 }
 0x43a   :  { %1575 = vmatprep.subr.bf16.mxu1 %v2164_v28 }
 0x43d   :  { %1576 = vmatpush1.bf16.msra.mxu1 %v2162_v30 }
 0x43e   :  { %1577 = vmatprep.subr.bf16.mxu1 %v2170_v32 }
 0x441   :  { %1578 = vmatpush1.bf16.msra.mxu1 %v2168_v34 }
 0x442   :  { %1579 = vmatprep.subr.bf16.mxu1 %v2176_v36 }
 0x445   :  { %1580 = vmatpush1.bf16.msra.mxu1 %v2174_v38 }
 0x4db   :  { %v1091_v42 = vpop.f32.mrb[12].mxu1 }
 0x4dc   :  { %v1092_v43 = vadd.f32 %v1091_v42, %v970_v40  ;;  %v1093_v44 = vpop.f32.mrb[13].mxu1 }
 0x4dd   :  { %v1094_v45 = vadd.f32 %v1093_v44, %v974_v41  ;;  %v1095_v46 = vpop.f32.mrb[14].mxu1 }
 0x4de   :  { %2185 = vtanh.f32 %v1092_v43  ;;  %v1096_v47 = vpop.f32.mrb[15].mxu1 }
 0x4df   :  { %2187 = vtanh.f32 %v1094_v45 }
 0x4e8   :  { %v2186_v48 = vpop.eup %2185 }
 0x4e9   :  { %v2188_v49 = vpop.eup %2187  ;;  %v1100_v51 = vpack.c.bf16 %v2186_v48, %v2186_v48 }
 0x4ea   :  { %v1101_v50 = vpack.c.bf16 %v2188_v49, %v2188_v49 }
 0x4ec   :  { %1540 = vmatprep.mubr.bf16.mxu0 %v1101_v50  ;;  %1581 = vmatprep.mubr.bf16.mxu1 %v1101_v50 }
 0x4ed   :  { %1541 = vmatmul.mubr.bf16.vlgmr.msra.gmra.mrb[4].mxu0 %v1100_v51  ;;  %1582 = vmatmul.mubr.bf16.vlgmr.msra.gmra.mrb[16].mxu1 %v1100_v51 }
 0x4ee   :  { %2216 = shalt.err (!%p2213_p4)
}
 0x4ef   :  { %s2217_s8 = scalar_lea.hbm %s2970_s13, 128 }
 0x4f0   :  { %p2218_p5 = scmp.ne.s32.totalorder %s2970_s13, %s2217_s8  ;;  %p2221_p6 = scmp.lt.u32.totalorder %s2217_s8, %s2970_s13 }
 0x4f2   :  { %p2223_p7 = pnand %p2221_p6, %p2218_p5 }
 0x4f4   :  { %2226 = shalt.err (!%p2223_p7)
}
 0x4f5   :  { %1628 = dma.vmem_to_hbm [thread:$0]  %s1626_s11, 128, %s2970_s13, [#allocation3]   ;;  %v1178_v52 = vsub.s32 2, %v2592_v24  ;;  %v1166_v53 = vld [vmem:[%s2969_s12] sm:$0xf]  ;;  %v1182_v54 = vsub.s32 3, %v2592_v24 }
 0x4f6   :  { %v1171_v55 = vrot.slane %v1166_v53, %v2595_v25  ;;  %v1175_v57 = vrot.slane %v1166_v53, %v2601_v27  ;;  %s2257_s12 = smov [#allocation4]  }
 0x4f7   :  { %v1179_v56 = vrot.slane %v1166_v53, %v1178_v52  ;;  %v1183_v58 = vrot.slane %v1166_v53, %v1182_v54  ;;  %s1635_s13 = sshll.u32 %s2257_s12, 4  ;;  %s1636_s13 = int_to_ptr.vmem [resolvable:$true] %s1635_s13 }
 0x4f8   :  { %s2227_s22 = scalar_lea.vmem %s1636_s13, 512  ;;  %p2232_p9 = scmp.lt.s32.totalorder %s1636_s13, %s1636_s13 }
 0x4f9   :  { %p2228_p8 = scmp.ne.s32.totalorder %s1636_s13, %s2227_s22  ;;  %p2233_p10 = scmp.lt.s32.totalorder %s2227_s22, %s2227_s22 }
 0x4fb   :  { %p2234_p11 = por %p2233_p10, %p2232_p9 }
 0x4fd   :  { %p2235_p12 = pnand %p2234_p11, %p2228_p8 }
 0x5c0   :  { %v1542_v59 = vpop.f32.mrb[4].mxu0  ;;  %v1583_v60 = vpop.f32.mrb[16].mxu1 }
 0x5c1   :  { %v1543_v61 = vadd.f32 %v1542_v59, %v1171_v55  ;;  %v1584_v62 = vadd.f32 %v1583_v60, %v1179_v56  ;;  %v1544_v63 = vpop.f32.mrb[5].mxu0  ;;  %v1585_v0 = vpop.f32.mrb[17].mxu1 }
 0x5c2   :  { %v1545_v1 = vadd.f32 %v1544_v63, %v1175_v57  ;;  %v1586_v2 = vadd.f32 %v1585_v0, %v1183_v58  ;;  %v1546_v3 = vpop.f32.mrb[6].mxu0  ;;  %v1587_v4 = vpop.f32.mrb[18].mxu1 }
 0x5c3   :  { %v1830_v5 = vmul.f32 -1.442695, %v1543_v61  ;;  %v1832_v6 = vmul.f32 -1.442695, %v1584_v62  ;;  %v1547_v7 = vpop.f32.mrb[7].mxu0  ;;  %v1588_v24 = vpop.f32.mrb[19].mxu1 }
 0x5c4   :  { %v1831_v8 = vmul.f32 -1.442695, %v1545_v1  ;;  %v1833_v25 = vmul.f32 -1.442695, %v1586_v2 }
 0x5c5   :  { %2189 = vpow2.f32 %v1830_v5 }
 0x5c6   :  { %2191 = vpow2.f32 %v1832_v6 }
 0x5c7   :  { %2193 = vpow2.f32 %v1831_v8 }
 0x5c8   :  { %2195 = vpow2.f32 %v1833_v25 }
 0x5cf   :  { %v2190_v27 = vpop.eup %2189 }
 0x5d0   :  { %v2192_v9 = vpop.eup %2191  ;;  %v1602_v10 = vadd.f32 1.0, %v2190_v27 }
 0x5d1   :  { %v2194_v11 = vpop.eup %2193  ;;  %v1604_v12 = vadd.f32 1.0, %v2192_v9 }
 0x5d2   :  { %v2196_v13 = vpop.eup %2195  ;;  %2197 = vrcp.f32 %v1602_v10  ;;  %v1603_v14 = vadd.f32 1.0, %v2194_v11 }
 0x5d3   :  { %2199 = vrcp.f32 %v1604_v12  ;;  %v1605_v15 = vadd.f32 1.0, %v2196_v13 }
 0x5d4   :  { %2201 = vrcp.f32 %v1603_v14 }
 0x5d5   :  { %2203 = vrcp.f32 %v1605_v15 }
 0x5dc   :  { %v2198_v16 = vpop.eup %2197 }
 0x5dd   :  { %v2200_v17 = vpop.eup %2199  ;;  %1615 = vst [vmem:[#allocation4] sm:$0xff] %v2198_v16 }
 0x5de   :  { %v2202_v18 = vpop.eup %2201  ;;  %1617 = vst [vmem:[#allocation4 + $0x10] sm:$0xff] %v2200_v17 }
 0x5df   :  { %v2204_v19 = vpop.eup %2203  ;;  %1616 = vst [vmem:[#allocation4 + $0x8] sm:$0xff] %v2202_v18 }
 0x5e0   :  { %1618 = vst [vmem:[#allocation4 + $0x18] sm:$0xff] %v2204_v19 }
 0x5e1   :  { %2238 = shalt.err (!%p2235_p12)
}
 0x5e2   :  { %s2239_s24 = scalar_lea.hbm %s2971_s14, 512 }
 0x5e3   :  { %p2240_p13 = scmp.ne.s32.totalorder %s2971_s14, %s2239_s24  ;;  %p2243_p0 = scmp.lt.u32.totalorder %s2239_s24, %s2971_s14 }
 0x5e5   :  { %p2245_p1 = pnand %p2243_p0, %p2240_p13 }
 0x5e7   :  { %2248 = shalt.err (!%p2245_p1)
}
 0x5e8   :  { %1638 = dma.vmem_to_hbm [thread:$0]  %s1636_s13, 512, %s2971_s14, [#allocation5]  }
 0x5e9   :  { %2249 = dma.done.wait [#allocation3], 128  }
 0x5ea   :  { %2250 = vsyncadd [#allocation3], 4294967168 }
 0x5eb   :  { %2251 = dma.done.wait [#allocation5], 512  }
 0x5ec   :  { %2252 = vsyncadd [#allocation5], 4294966784 }
 0x5ed   :  { %1645 = vsyncpa [#allocation3], 1 }
 0x5ee   :  { %1646 = vsyncpa [#allocation5], 1 }

</bundles_post_ra>
